<compile_context>
chip_gen: v7x
topology: tpu7x:2x2x1
jax: 0.10.0
libtpu: 0.0.40
codegen_flags: <defaults>
</compile_context>

<pallas_src>
import functools

import jax
import jax.numpy as jnp
from jax.experimental import pallas as pl
from jax.experimental.pallas import tpu as pltpu

BN_EPS = 1e-5
LANE = 128
NEG_BIG = -1e30  # padded output lanes: exp(-1e30 - m) underflows to exactly 0


def _round_up(n, m):
    return ((n + m - 1) // m) * m


# ----------------------------------------------------------------------------
# Kernel
# ----------------------------------------------------------------------------

def _make_mlp_kernel(num_hidden_layers: int):
    """Fused MLP forward.

    Refs:
      x_ref    : (B, D)        f32   input, feature-padded to D lanes
      w_ref    : (L+1, D, D)   bf16  all Linear weights, zero padded to D x D
      rows_ref : (2L+1, D)     f32   [gamma_0, beta_0, ..., gamma_{L-1},
                                      beta_{L-1}, b_out(-1e30 padded)]
      o_ref    : (B, D)        f32   softmax output (padded lanes are 0)

    Hidden Linear biases are not passed: in train-mode BatchNorm the batch
    mean subtraction cancels them exactly.
    """

    def kernel(x_ref, w_ref, rows_ref, o_ref):
        h = x_ref[...].astype(jnp.bfloat16)          # bf16 activations

        for l in range(num_hidden_layers):
            # Linear (MXU, bf16 operands, f32 accumulation). No bias (BN cancels it).
            y = jnp.dot(h, w_ref[l], preferred_element_type=jnp.float32)

            # BatchNorm1d (training mode, biased variance): centered two-pass
            # stats computed fully in VMEM, affine folded into scale/shift.
            gamma = rows_ref[2 * l: 2 * l + 1, :]        # (1, D) f32
            beta = rows_ref[2 * l + 1: 2 * l + 2, :]     # (1, D) f32
            mean = jnp.mean(y, axis=0, keepdims=True)
            yc = y - mean
            var = jnp.mean(yc * yc, axis=0, keepdims=True)
            scale = gamma * jax.lax.rsqrt(var + BN_EPS)

            # BN + ReLU fused; single cast to bf16 feeds the next matmul.
            h = jnp.maximum(yc * scale + beta, 0.0).astype(jnp.bfloat16)

        b_out = rows_ref[2 * num_hidden_layers: 2 * num_hidden_layers + 1, :]
        logits = jnp.dot(h, w_ref[num_hidden_layers],
                         preferred_element_type=jnp.float32) + b_out

        # Softmax over lanes (dim=1). Padded lanes carry -1e30 -> exp == 0.
        m = jnp.max(logits, axis=1, keepdims=True)
        e = jnp.exp(logits - m)
        s = jnp.sum(e, axis=1, keepdims=True)
        inv = pl.reciprocal(s, approx=True)   # EUP vrcp (free slot)
        inv = inv * (2.0 - s * inv)           # one Newton step -> exact parity
        o_ref[...] = e * inv                  # lane-dense (D-wide) store

    return kernel


# ----------------------------------------------------------------------------
# Parameters (PyTorch-equivalent logical shapes) + packed kernel layout
# ----------------------------------------------------------------------------

def init_params(key, layer_sizes, output_units):
    """Deterministic params mirroring the PyTorch module (unpadded, f32)."""
    params = []
    sizes = list(layer_sizes)
    for i in range(len(sizes) - 1):
        d_in, d_out = sizes[i], sizes[i + 1]
        key, kw, kb = jax.random.split(key, 3)
        bound = 1.0 / float(d_in) ** 0.5
        w = jax.random.uniform(kw, (d_in, d_out), jnp.float32, -bound, bound)
        b = jax.random.uniform(kb, (1, d_out), jnp.float32, -bound, bound)
        gamma = jnp.ones((1, d_out), jnp.float32)   # BatchNorm1d default weight
        beta = jnp.zeros((1, d_out), jnp.float32)   # BatchNorm1d default bias
        params.append((w, b, gamma, beta))
    d_in = sizes[-1]
    key, kw, kb = jax.random.split(key, 3)
    bound = 1.0 / float(d_in) ** 0.5
    w = jax.random.uniform(kw, (d_in, output_units), jnp.float32, -bound, bound)
    b = jax.random.uniform(kb, (1, output_units), jnp.float32, -bound, bound)
    params.append((w, b))
    return params


def prepare_kernel_params(params):
    """Pack all parameters into TWO kernel operands (2 DMAs total).

      w_stack : (L+1, D, D) bf16 -- every Linear weight, zero-padded to D x D
      rows    : (2L+1, D)   f32  -- gamma/beta per hidden layer + final bias

    D = 128-aligned max feature dim across the network.  Zero weight padding
    is inert (padded activation lanes stay exactly 0).  Hidden Linear biases
    are dropped (train-mode BN cancels them).  The final bias row is padded
    with -1e30 so padded softmax lanes vanish.
    """
    dims = []
    for p in params[:-1]:
        dims += [p[0].shape[0], p[0].shape[1]]
    dims += [params[-1][0].shape[0], params[-1][0].shape[1]]
    D = _round_up(max(dims), LANE)

    L = len(params) - 1
    w_stack = jnp.zeros((L + 1, D, D), jnp.float32)
    rows = jnp.zeros((2 * L + 1, D), jnp.float32)

    for l, (w, _b, gamma, beta) in enumerate(params[:-1]):
        d_in, d_out = w.shape
        w_stack = w_stack.at[l, :d_in, :d_out].set(w)
        rows = rows.at[2 * l, :d_out].set(gamma[0])
        # beta padded lanes stay 0 -> padded hidden activations stay exactly 0.
        rows = rows.at[2 * l + 1, :d_out].set(beta[0])

    w, b = params[-1]
    d_in, d_out = w.shape
    w_stack = w_stack.at[L, :d_in, :d_out].set(w)
    rows = rows.at[2 * L].set(jnp.full((D,), NEG_BIG, jnp.float32))
    rows = rows.at[2 * L, :d_out].set(b[0])

    return w_stack.astype(jnp.bfloat16), rows


# ----------------------------------------------------------------------------
# pallas_call wrapper (gridless: whole problem is one fused VMEM block)
# ----------------------------------------------------------------------------

@functools.partial(jax.jit, static_argnames=("num_hidden", "output_units"))
def mlp_forward(x, w_stack, rows, *, num_hidden, output_units):
    batch, d_in = x.shape
    D = w_stack.shape[-1]

    # Pad the input feature dim to D lanes (zero columns are inert: matching
    # weight rows are zero).
    x_p = jnp.pad(x, ((0, 0), (0, D - d_in))) if D != d_in else x

    vmem_spec = pl.BlockSpec(memory_space=pltpu.MemorySpace.VMEM)

    # Explicit VMEM budget: operands + output + a few live f32 activation
    # slabs, with headroom; capped at 48 MiB so it is safe on v7x (64 MiB).
    operand_bytes = (x_p.size * x_p.dtype.itemsize
                     + w_stack.size * w_stack.dtype.itemsize
                     + rows.size * rows.dtype.itemsize
                     + batch * D * 4)                 # output
    est_bytes = operand_bytes + 4 * batch * D * 4     # live f32 activations
    vmem_limit = int(min(48 << 20, max(16 << 20, 4 * est_bytes)))

    n_matmuls = num_hidden + 1
    cost = pl.CostEstimate(
        flops=int(2 * batch * D * D * n_matmuls),
        transcendentals=int(batch * D + num_hidden * D + batch),  # exp, rsqrt, recip
        bytes_accessed=int(operand_bytes))

    out = pl.pallas_call(
        _make_mlp_kernel(num_hidden),
        out_shape=jax.ShapeDtypeStruct((batch, D), jnp.float32),
        in_specs=[vmem_spec, vmem_spec, vmem_spec],
        out_specs=vmem_spec,
        compiler_params=pltpu.CompilerParams(vmem_limit_bytes=vmem_limit),
        cost_estimate=cost,
    )(x_p, w_stack, rows)

    # Slice the lane padding back off outside the kernel.
    return out[:, :output_units]


# ----------------------------------------------------------------------------
# References
# ----------------------------------------------------------------------------

def reference_pytorch(x, params):
    """Faithful f32 reference of the PyTorch forward (train-mode BN)."""
    h = x
    for (w, b, gamma, beta) in params[:-1]:
        y = h @ w + b
        mean = jnp.mean(y, axis=0, keepdims=True)
        var = jnp.mean((y - mean) ** 2, axis=0, keepdims=True)
        y = (y - mean) / jnp.sqrt(var + BN_EPS) * gamma + beta
        h = jnp.maximum(y, 0.0)
    w, b = params[-1]
    return jax.nn.softmax(h @ w + b, axis=1)


def reference_kernel_mirror(x, params):
    """Mirrors the kernel arithmetic (bf16 matmuls/activations, no hidden
    bias, centered BN folded into scale/shift)."""
    h = x.astype(jnp.bfloat16)
    for (w, _b, gamma, beta) in params[:-1]:
        y = jnp.dot(h, w.astype(jnp.bfloat16),
                    preferred_element_type=jnp.float32)
        mean = jnp.mean(y, axis=0, keepdims=True)
        yc = y - mean
        var = jnp.mean(yc * yc, axis=0, keepdims=True)
        scale = gamma * jax.lax.rsqrt(var + BN_EPS)
        h = jnp.maximum(yc * scale + beta, 0.0).astype(jnp.bfloat16)
    w, b = params[-1]
    logits = jnp.dot(h, w.astype(jnp.bfloat16),
                     preferred_element_type=jnp.float32) + b
    return jax.nn.softmax(logits, axis=1)


if __name__ == "__main__":
    # Small shapes consistent with the module: layer_sizes=[32, 64, 32], out=16.
    layer_sizes = [32, 64, 32]
    output_units = 16
    batch = 8
    num_hidden = len(layer_sizes) - 1

    key = jax.random.PRNGKey(0)
    key, kx = jax.random.split(key)
    x = jax.random.normal(kx, (batch, layer_sizes[0]), jnp.float32)

    params = init_params(key, layer_sizes, output_units)
    w_stack, rows = prepare_kernel_params(params)

    out = mlp_forward(x, w_stack, rows,
                      num_hidden=num_hidden, output_units=output_units)
    out = jax.block_until_ready(out)

    mirror = reference_kernel_mirror(x, params)      # same arithmetic path
    faithful = reference_pytorch(x, params)          # f32 PyTorch semantics

    assert out.shape == (batch, output_units)
    assert jnp.allclose(jnp.sum(out, axis=1), 1.0, atol=1e-4), "rows must sum to 1"
    assert jnp.allclose(out, mirror, atol=1e-4), "mismatch vs kernel-mirror reference"
    assert jnp.allclose(out, faithful, atol=2e-2), "mismatch vs f32 PyTorch reference"

    print("KERNEL_OK")
</pallas_src>

<mosaic_0001>
module attributes {stable_mosaic.version = 11 : i64} {
  func.func @kernel(%arg0: memref<8x128xf32, #tpu.memory_space<vmem>>, %arg1: memref<3x128x128xbf16, #tpu.memory_space<vmem>>, %arg2: memref<5x128xf32, #tpu.memory_space<vmem>>, %arg3: memref<8x128xf32, #tpu.memory_space<vmem>>) attributes {dimension_semantics = [], scalar_prefetch = 0 : i64, scratch_operands = 0 : i64, tpu.core_type = #tpu.core_type<tc>} {
    %c0 = arith.constant 0 : index
    %c0_0 = arith.constant 0 : index
    %0 = vector.load %arg0[%c0, %c0_0] : memref<8x128xf32, #tpu.memory_space<vmem>>, vector<8x128xf32>
    %1 = arith.truncf %0 : vector<8x128xf32> to vector<8x128xbf16>
    %c0_1 = arith.constant 0 : index
    %c0_2 = arith.constant 0 : index
    %c0_3 = arith.constant 0 : index
    %2 = vector.load %arg1[%c0_1, %c0_2, %c0_3] : memref<3x128x128xbf16, #tpu.memory_space<vmem>>, vector<1x128x128xbf16>
    %3 = vector.shape_cast %2 : vector<1x128x128xbf16> to vector<128x128xbf16>
    %cst = arith.constant dense<0.000000e+00> : vector<8x128xf32>
    %4 = tpu.matmul %1, %3, %cst {dimension_numbers = #tpu.dot_dimension_numbers<[1], [0], [0], [1], [0, 0, 1, 1], [], []>} : vector<8x128xbf16>, vector<128x128xbf16>, vector<8x128xf32> -> vector<8x128xf32>
    %c0_4 = arith.constant 0 : index
    %c0_5 = arith.constant 0 : index
    %5 = vector.load %arg2[%c0_4, %c0_5] : memref<5x128xf32, #tpu.memory_space<vmem>>, vector<1x128xf32>
    %c1 = arith.constant 1 : index
    %c0_6 = arith.constant 0 : index
    %6 = vector.load %arg2[%c1, %c0_6] : memref<5x128xf32, #tpu.memory_space<vmem>>, vector<1x128xf32>
    %cst_7 = arith.constant dense<0.000000e+00> : vector<128xf32>
    %7 = vector.multi_reduction <add>, %4, %cst_7 [0] : vector<8x128xf32> to vector<128xf32>
    %8 = vector.shape_cast %7 : vector<128xf32> to vector<1x128xf32>
    %cst_8 = arith.constant 8.000000e+00 : f32
    %9 = vector.broadcast %cst_8 : f32 to vector<1x128xf32>
    %10 = arith.divf %8, %9 : vector<1x128xf32>
    %11 = vector.broadcast %10 : vector<1x128xf32> to vector<8x128xf32>
    %12 = arith.subf %4, %11 : vector<8x128xf32>
    %13 = arith.mulf %12, %12 : vector<8x128xf32>
    %cst_9 = arith.constant dense<0.000000e+00> : vector<128xf32>
    %14 = vector.multi_reduction <add>, %13, %cst_9 [0] : vector<8x128xf32> to vector<128xf32>
    %15 = vector.shape_cast %14 : vector<128xf32> to vector<1x128xf32>
    %cst_10 = arith.constant 8.000000e+00 : f32
    %16 = vector.broadcast %cst_10 : f32 to vector<1x128xf32>
    %17 = arith.divf %15, %16 : vector<1x128xf32>
    %cst_11 = arith.constant 9.99999974E-6 : f32
    %18 = vector.broadcast %cst_11 : f32 to vector<1x128xf32>
    %19 = arith.addf %17, %18 : vector<1x128xf32>
    %20 = math.rsqrt %19 : vector<1x128xf32>
    %21 = arith.mulf %5, %20 : vector<1x128xf32>
    %22 = vector.broadcast %21 : vector<1x128xf32> to vector<8x128xf32>
    %23 = arith.mulf %12, %22 : vector<8x128xf32>
    %24 = vector.broadcast %6 : vector<1x128xf32> to vector<8x128xf32>
    %25 = arith.addf %23, %24 : vector<8x128xf32>
    %cst_12 = arith.constant 0.000000e+00 : f32
    %26 = vector.broadcast %cst_12 : f32 to vector<8x128xf32>
    %27 = arith.maximumf %25, %26 : vector<8x128xf32>
    %28 = arith.truncf %27 : vector<8x128xf32> to vector<8x128xbf16>
    %c1_13 = arith.constant 1 : index
    %c0_14 = arith.constant 0 : index
    %c0_15 = arith.constant 0 : index
    %29 = vector.load %arg1[%c1_13, %c0_14, %c0_15] : memref<3x128x128xbf16, #tpu.memory_space<vmem>>, vector<1x128x128xbf16>
    %30 = vector.shape_cast %29 : vector<1x128x128xbf16> to vector<128x128xbf16>
    %cst_16 = arith.constant dense<0.000000e+00> : vector<8x128xf32>
    %31 = tpu.matmul %28, %30, %cst_16 {dimension_numbers = #tpu.dot_dimension_numbers<[1], [0], [0], [1], [0, 0, 1, 1], [], []>} : vector<8x128xbf16>, vector<128x128xbf16>, vector<8x128xf32> -> vector<8x128xf32>
    %c2 = arith.constant 2 : index
    %c0_17 = arith.constant 0 : index
    %32 = vector.load %arg2[%c2, %c0_17] : memref<5x128xf32, #tpu.memory_space<vmem>>, vector<1x128xf32>
    %c3 = arith.constant 3 : index
    %c0_18 = arith.constant 0 : index
    %33 = vector.load %arg2[%c3, %c0_18] : memref<5x128xf32, #tpu.memory_space<vmem>>, vector<1x128xf32>
    %cst_19 = arith.constant dense<0.000000e+00> : vector<128xf32>
    %34 = vector.multi_reduction <add>, %31, %cst_19 [0] : vector<8x128xf32> to vector<128xf32>
    %35 = vector.shape_cast %34 : vector<128xf32> to vector<1x128xf32>
    %cst_20 = arith.constant 8.000000e+00 : f32
    %36 = vector.broadcast %cst_20 : f32 to vector<1x128xf32>
    %37 = arith.divf %35, %36 : vector<1x128xf32>
    %38 = vector.broadcast %37 : vector<1x128xf32> to vector<8x128xf32>
    %39 = arith.subf %31, %38 : vector<8x128xf32>
    %40 = arith.mulf %39, %39 : vector<8x128xf32>
    %cst_21 = arith.constant dense<0.000000e+00> : vector<128xf32>
    %41 = vector.multi_reduction <add>, %40, %cst_21 [0] : vector<8x128xf32> to vector<128xf32>
    %42 = vector.shape_cast %41 : vector<128xf32> to vector<1x128xf32>
    %cst_22 = arith.constant 8.000000e+00 : f32
    %43 = vector.broadcast %cst_22 : f32 to vector<1x128xf32>
    %44 = arith.divf %42, %43 : vector<1x128xf32>
    %cst_23 = arith.constant 9.99999974E-6 : f32
    %45 = vector.broadcast %cst_23 : f32 to vector<1x128xf32>
    %46 = arith.addf %44, %45 : vector<1x128xf32>
    %47 = math.rsqrt %46 : vector<1x128xf32>
    %48 = arith.mulf %32, %47 : vector<1x128xf32>
    %49 = vector.broadcast %48 : vector<1x128xf32> to vector<8x128xf32>
    %50 = arith.mulf %39, %49 : vector<8x128xf32>
    %51 = vector.broadcast %33 : vector<1x128xf32> to vector<8x128xf32>
    %52 = arith.addf %50, %51 : vector<8x128xf32>
    %cst_24 = arith.constant 0.000000e+00 : f32
    %53 = vector.broadcast %cst_24 : f32 to vector<8x128xf32>
    %54 = arith.maximumf %52, %53 : vector<8x128xf32>
    %55 = arith.truncf %54 : vector<8x128xf32> to vector<8x128xbf16>
    %c4 = arith.constant 4 : index
    %c0_25 = arith.constant 0 : index
    %56 = vector.load %arg2[%c4, %c0_25] : memref<5x128xf32, #tpu.memory_space<vmem>>, vector<1x128xf32>
    %c2_26 = arith.constant 2 : index
    %c0_27 = arith.constant 0 : index
    %c0_28 = arith.constant 0 : index
    %57 = vector.load %arg1[%c2_26, %c0_27, %c0_28] : memref<3x128x128xbf16, #tpu.memory_space<vmem>>, vector<1x128x128xbf16>
    %58 = vector.shape_cast %57 : vector<1x128x128xbf16> to vector<128x128xbf16>
    %cst_29 = arith.constant dense<0.000000e+00> : vector<8x128xf32>
    %59 = tpu.matmul %55, %58, %cst_29 {dimension_numbers = #tpu.dot_dimension_numbers<[1], [0], [0], [1], [0, 0, 1, 1], [], []>} : vector<8x128xbf16>, vector<128x128xbf16>, vector<8x128xf32> -> vector<8x128xf32>
    %60 = vector.broadcast %56 : vector<1x128xf32> to vector<8x128xf32>
    %61 = arith.addf %59, %60 : vector<8x128xf32>
    %cst_30 = arith.constant dense<0xFF800000> : vector<8xf32>
    %62 = vector.multi_reduction <maximumf>, %61, %cst_30 [1] : vector<8x128xf32> to vector<8xf32>
    %63 = vector.shape_cast %62 : vector<8xf32> to vector<8x1xf32>
    %64 = vector.broadcast %63 : vector<8x1xf32> to vector<8x128xf32>
    %65 = arith.subf %61, %64 : vector<8x128xf32>
    %66 = math.exp %65 : vector<8x128xf32>
    %cst_31 = arith.constant dense<0.000000e+00> : vector<8xf32>
    %67 = vector.multi_reduction <add>, %66, %cst_31 [1] : vector<8x128xf32> to vector<8xf32>
    %68 = vector.shape_cast %67 : vector<8xf32> to vector<8x1xf32>
    %69 = tpu.reciprocal %68 {approx = true} : vector<8x1xf32> -> vector<8x1xf32>
    %70 = arith.mulf %68, %69 : vector<8x1xf32>
    %cst_32 = arith.constant 2.000000e+00 : f32
    %71 = vector.broadcast %cst_32 : f32 to vector<8x1xf32>
    %72 = arith.subf %71, %70 : vector<8x1xf32>
    %73 = arith.mulf %69, %72 : vector<8x1xf32>
    %74 = vector.broadcast %73 : vector<8x1xf32> to vector<8x128xf32>
    %75 = arith.mulf %66, %74 : vector<8x128xf32>
    %c0_33 = arith.constant 0 : index
    %c0_34 = arith.constant 0 : index
    %76 = vector.load %arg3[%c0_33, %c0_34] : memref<8x128xf32, #tpu.memory_space<vmem>>, vector<8x128xf32>
    tpu.vector_store %arg3[%c0_33, %c0_34], %75 {strides = array<i32>} : memref<8x128xf32, #tpu.memory_space<vmem>>, vector<8x128xf32>,
    return
  }
}

</mosaic_0001>

<bundles_post_ra>
// kernel: mlp_forward.1
= control target key start
LH: loop header
LB: loop body
LE: loop exit
PB: predicated region body
PF: predicated region fallthrough
CT: control target
= control target key end

     0   :  { %8 = vsyncpa [#allocation3], 0  ;;  %s744_s0 = inlined_call_operand.vmem [shape: f32[8,128], index: 0, kind: input, shape index: {}]   ;;  %s745_s1 = inlined_call_operand.hbm [shape: bf16[3,128,128], index: 1, kind: input, shape index: {}]   ;;  %s746_s2 = inlined_call_operand.vmem [shape: f32[5,128], index: 2, kind: input, shape index: {}]   ;;  %s747_s3 = inlined_call_operand.hbm [shape: f32[8,128], index: 3, kind: output, shape index: {}]  }
   0x1   :  { %9 = vsyncpa [#allocation4], 0  ;;  %s646_s12 = smov [#allocation2]   ;;  %s598_s16 = scalar_lea.hbm %s745_s1, 3072 }
   0x2   :  { %s17_s13 = sshll.u32 %s646_s12, 4  ;;  %p599_p0 = scmp.ne.s32.totalorder %s745_s1, %s598_s16  ;;  %s18_s13 = int_to_ptr.vmem [resolvable:$true] %s17_s13 }
   0x3   :  { %p602_p1 = scmp.lt.u32.totalorder %s598_s16, %s745_s1 }
   0x5   :  { %p604_p2 = pnand %p602_p1, %p599_p0 }
   0x7   :  { %607 = shalt.err (!%p604_p2)
}
   0x8   :  { %s608_s21 = scalar_lea.vmem %s18_s13, 3072  ;;  %p613_p4 = scmp.lt.s32.totalorder %s18_s13, %s18_s13 }
   0x9   :  { %p609_p3 = scmp.ne.s32.totalorder %s18_s13, %s608_s21  ;;  %p614_p5 = scmp.lt.s32.totalorder %s608_s21, %s608_s21 }
   0xb   :  { %p615_p6 = por %p614_p5, %p613_p4 }
   0xd   :  { %p616_p7 = pnand %p615_p6, %p609_p3 }
   0xf   :  { %619 = shalt.err (!%p616_p7)
}
  0x10   :  { %s647_s22 = smov 64   ;;  %s648_s23 = smov 4  }
  0x11   :  { %23 = dma.hbm_to_vmem [thread:$0]  %s745_s1, 3072, %s18_s13, [#allocation3], %s647_s22, %s647_s22, %s648_s23  }
  0x12   :  { %642 = dma.done.wait [#allocation3], 3072  }
  0x13   :  { %643 = vsyncadd [#allocation3], 4294964224  ;;  %v649_v0 = vmov 0.0   ;;  %vm650_vm0 = vmmov 0   ;;  %v566_v1 = vld [vmem:[#allocation2] sm:$0xff]   ;;  %v567_v2 = vld [vmem:[#allocation2 + $0x8] sm:$0xff]   ;;  %v158_v40 = vlaneseq }
  0x14   :  { %500 = vmatprep.subr.bf16.mxu0 %v649_v0  ;;  %516 = vmatprep.mubr.msk.bf16.mxu0 %vm650_vm0, %v649_v0  ;;  %v568_v3 = vld [vmem:[#allocation2 + $0x10] sm:$0xff]   ;;  %v569_v4 = vld [vmem:[#allocation2 + $0x18] sm:$0xff]   ;;  %v570_v5 = vld [vmem:[#allocation2 + $0x20] sm:$0xff]   ;;  %s651_s9 = smov [#allocation5]  }
  0x15   :  { %520 = vmatprep.subr.bf16.mxu1 %v649_v0  ;;  %536 = vmatprep.mubr.msk.bf16.mxu1 %vm650_vm0, %v649_v0  ;;  %v571_v6 = vld [vmem:[#allocation2 + $0x28] sm:$0xff]   ;;  %v572_v7 = vld [vmem:[#allocation2 + $0x30] sm:$0xff]   ;;  %v573_v8 = vld [vmem:[#allocation2 + $0x38] sm:$0xff]   ;;  %v159_v41 = vshrl.u32 %v158_v40, 7  ;;  %s437_s10 = sshll.u32 %s651_s9, 4  ;;  %s438_s10 = int_to_ptr.vmem [resolvable:$true] %s437_s10 }
  0x16   :  { %501 = vmatpush3.bf16.msra.mxu0 %v566_v1  ;;  %v30_v9 = vld [vmem:[%s744_s0] sm:$0xff]  ;;  %v574_v11 = vld [vmem:[#allocation2 + $0x40] sm:$0xff]   ;;  %v575_v12 = vld [vmem:[#allocation2 + $0x48] sm:$0xff]   ;;  %p625_p9 = scmp.lt.s32.totalorder %s438_s10, %s438_s10 }
  0x17   :  { %502 = vmatprep.subr.bf16.mxu0 %v649_v0  ;;  %v31_v10 = vpack.c.bf16 %v30_v9, %v30_v9  ;;  %521 = vmatpush3.bf16.msra.mxu1 %v574_v11  ;;  %v576_v13 = vld [vmem:[#allocation2 + $0x50] sm:$0xff]   ;;  %v577_v14 = vld [vmem:[#allocation2 + $0x58] sm:$0xff]   ;;  %v578_v15 = vld [vmem:[#allocation2 + $0x60] sm:$0xff]   ;;  %v160_v43 = vsub.s32 0, %v159_v41 }
  0x18   :  { %522 = vmatprep.subr.bf16.mxu1 %v649_v0  ;;  %v579_v16 = vld [vmem:[#allocation2 + $0x68] sm:$0xff]   ;;  %v580_v17 = vld [vmem:[#allocation2 + $0x70] sm:$0xff]   ;;  %v581_v18 = vld [vmem:[#allocation2 + $0x78] sm:$0xff]  }
  0x19   :  { %v136_v42 = vld [vmem:[%s746_s2] sm:$0x1]  ;;  %v454_v47 = vld [vmem:[%s746_s2 + $0x1] ss:$0 sm:$0xff]  ;;  %v582_v52 = vld [vmem:[#allocation2 + $0x80] sm:$0xff]  }
  0x1a   :  { %503 = vmatpush3.bf16.msra.mxu0 %v567_v2  ;;  %v583_v53 = vld [vmem:[#allocation2 + $0x88] sm:$0xff]   ;;  %v584_v54 = vld [vmem:[#allocation2 + $0x90] sm:$0xff]   ;;  %v585_v55 = vld [vmem:[#allocation2 + $0x98] sm:$0xff]  }
  0x1b   :  { %504 = vmatprep.subr.bf16.mxu0 %v649_v0  ;;  %523 = vmatpush3.bf16.msra.mxu1 %v575_v12  ;;  %v586_v56 = vld [vmem:[#allocation2 + $0xa0] sm:$0xff]   ;;  %v587_v57 = vld [vmem:[#allocation2 + $0xa8] sm:$0xff]   ;;  %v588_v58 = vld [vmem:[#allocation2 + $0xb0] sm:$0xff]  }
  0x1c   :  { %524 = vmatprep.subr.bf16.mxu1 %v649_v0  ;;  %v589_v59 = vld [vmem:[#allocation2 + $0xb8] sm:$0xff]  }
  0x1e   :  { %505 = vmatpush3.bf16.msra.mxu0 %v568_v3 }
  0x1f   :  { %506 = vmatprep.subr.bf16.mxu0 %v649_v0  ;;  %525 = vmatpush3.bf16.msra.mxu1 %v576_v13 }
  0x20   :  { %526 = vmatprep.subr.bf16.mxu1 %v649_v0 }
  0x22   :  { %507 = vmatpush3.bf16.msra.mxu0 %v569_v4 }
  0x23   :  { %508 = vmatprep.subr.bf16.mxu0 %v649_v0  ;;  %527 = vmatpush3.bf16.msra.mxu1 %v577_v14 }
  0x24   :  { %528 = vmatprep.subr.bf16.mxu1 %v649_v0 }
  0x26   :  { %509 = vmatpush3.bf16.msra.mxu0 %v570_v5 }
  0x27   :  { %510 = vmatprep.subr.bf16.mxu0 %v649_v0  ;;  %529 = vmatpush3.bf16.msra.mxu1 %v578_v15 }
  0x28   :  { %530 = vmatprep.subr.bf16.mxu1 %v649_v0 }
  0x2a   :  { %511 = vmatpush3.bf16.msra.mxu0 %v571_v6 }
  0x2b   :  { %512 = vmatprep.subr.bf16.mxu0 %v649_v0  ;;  %531 = vmatpush3.bf16.msra.mxu1 %v579_v16 }
  0x2c   :  { %532 = vmatprep.subr.bf16.mxu1 %v649_v0 }
  0x2e   :  { %513 = vmatpush3.bf16.msra.mxu0 %v572_v7 }
  0x2f   :  { %514 = vmatprep.subr.bf16.mxu0 %v649_v0  ;;  %533 = vmatpush3.bf16.msra.mxu1 %v580_v17  ;;  %v275_v17 = vld [vmem:[%s746_s2 + $0x2] sm:$0x1] }
  0x30   :  { %534 = vmatprep.subr.bf16.mxu1 %v649_v0 }
  0x32   :  { %515 = vmatpush3.bf16.msra.mxu0 %v573_v8 }
  0x33   :  { %540 = vmatprep.subr.bf16.mxu0 %v649_v0  ;;  %535 = vmatpush3.bf16.msra.mxu1 %v581_v18 }
  0x35   :  { %517 = vmatmul.mubr.bf16.vlgmr.msra.gmra.mrb[0].mxu0 %v31_v10 }
  0x36   :  { %556 = vmatprep.mubr.msk.bf16.mxu0 %vm650_vm0, %v649_v0  ;;  %541 = vmatpush3.bf16.msra.mxu0 %v582_v52 }
  0x37   :  { %542 = vmatprep.subr.bf16.mxu0 %v649_v0 }
  0x3a   :  { %543 = vmatpush3.bf16.msra.mxu0 %v583_v53 }
  0x3b   :  { %544 = vmatprep.subr.bf16.mxu0 %v649_v0 }
  0x3e   :  { %545 = vmatpush3.bf16.msra.mxu0 %v584_v54 }
  0x3f   :  { %546 = vmatprep.subr.bf16.mxu0 %v649_v0 }
  0x42   :  { %547 = vmatpush3.bf16.msra.mxu0 %v585_v55 }
  0x43   :  { %548 = vmatprep.subr.bf16.mxu0 %v649_v0 }
  0x46   :  { %549 = vmatpush3.bf16.msra.mxu0 %v586_v56 }
  0x47   :  { %550 = vmatprep.subr.bf16.mxu0 %v649_v0 }
  0x4a   :  { %551 = vmatpush3.bf16.msra.mxu0 %v587_v57 }
  0x4b   :  { %552 = vmatprep.subr.bf16.mxu0 %v649_v0 }
  0x4e   :  { %553 = vmatpush3.bf16.msra.mxu0 %v588_v58 }
  0x4f   :  { %554 = vmatprep.subr.bf16.mxu0 %v649_v0 }
  0x52   :  { %555 = vmatpush3.bf16.msra.mxu0 %v589_v59 }
 0x108   :  { %v130_v19 = vpop.f32.mrb[0].mxu0 }
 0x109   :  { %v138_v20 = vrot.slane %v130_v19, 4  ;;  %v518_v21 = vpop.f32.mrb[1].mxu0 }
 0x10a   :  { %v133_v22 = vpop.f32.mrb[2].mxu0  ;;  %v463_v21 = vld [vmem:[%s746_s2 + $0x3] ss:$0 sm:$0xff] }
 0x10b   :  { %v139_v23 = vadd.f32 %v138_v20, %v130_v19  ;;  %v519_v24 = vpop.f32.mrb[3].mxu0 }
 0x10d   :  { %v140_v25 = vrot.slane %v139_v23, 2 }
 0x10f   :  { %v141_v26 = vadd.f32 %v140_v25, %v139_v23 }
 0x111   :  { %v142_v27 = vrot.slane %v141_v26, 1 }
 0x113   :  { %v143_v28 = vadd.f32 %v142_v27, %v141_v26  ;;  %v464_v26 = vld [vmem:[%s746_s2 + $0x4] ss:$0 sm:$0xff]  ;;  %s620_s2 = scalar_lea.vmem %s438_s10, 128 }
 0x114   :  { %p621_p8 = scmp.ne.s32.totalorder %s438_s10, %s620_s2  ;;  %p626_p10 = scmp.lt.s32.totalorder %s620_s2, %s620_s2 }
 0x115   :  { %v145_v29 = vmul.f32 0.125, %v143_v28 }
 0x116   :  { %p627_p11 = por %p626_p10, %p625_p9 }
 0x117   :  { %v146_v30 = vsub.f32 %v130_v19, %v145_v29 }
 0x118   :  { %p628_p12 = pnand %p627_p11, %p621_p8 }
 0x119   :  { %v147_v31 = vmul.f32 %v146_v30, %v146_v30 }
 0x11b   :  { %v148_v32 = vrot.slane %v147_v31, 4 }
 0x11d   :  { %v149_v33 = vadd.f32 %v148_v32, %v147_v31 }
 0x11f   :  { %v150_v34 = vrot.slane %v149_v33, 2 }
 0x121   :  { %v151_v35 = vadd.f32 %v150_v34, %v149_v33 }
 0x123   :  { %v152_v36 = vrot.slane %v151_v35, 1 }
 0x125   :  { %v153_v37 = vadd.f32 %v152_v36, %v151_v35 }
 0x127   :  { %v154_v38 = vmul.f32 0.125, %v153_v37 }
 0x129   :  { %v155_v39 = vadd.f32 1e-05, %v154_v38 }
 0x12b   :  { %590 = vrsqrt.f32 %v155_v39 }
 0x135   :  { %v591_v44 = vpop.eup %590 }
 0x136   :  { %v157_v45 = vmul.f32 %v591_v44, %v136_v42 }
 0x138   :  { %v161_v46 = vrot.slane %v157_v45, %v160_v43 }
 0x13a   :  { %v162_v48 = vmul.f32 %v161_v46, %v146_v30 }
 0x13c   :  { %v167_v49 = vadd.f32 %v454_v47, %v162_v48 }
 0x13e   :  { %v168_v50 = vmax.f32 %v167_v49, 0.0 }
 0x140   :  { %v169_v51 = vpack.c.bf16 %v168_v50, %v168_v50 }
 0x142   :  { %537 = vmatmul.mubr.bf16.vlgmr.msra.gmra.mrb[0].mxu1 %v169_v51 }
 0x215   :  { %v269_v60 = vpop.f32.mrb[0].mxu1 }
 0x216   :  { %v277_v61 = vrot.slane %v269_v60, 4  ;;  %v538_v62 = vpop.f32.mrb[1].mxu1 }
 0x217   :  { %v272_v63 = vpop.f32.mrb[2].mxu1 }
 0x218   :  { %v278_v1 = vadd.f32 %v277_v61, %v269_v60  ;;  %v539_v2 = vpop.f32.mrb[3].mxu1 }
 0x21a   :  { %v279_v3 = vrot.slane %v278_v1, 2 }
 0x21c   :  { %v280_v4 = vadd.f32 %v279_v3, %v278_v1 }
 0x21e   :  { %v281_v5 = vrot.slane %v280_v4, 1 }
 0x220   :  { %v282_v6 = vadd.f32 %v281_v5, %v280_v4 }
 0x222   :  { %v283_v7 = vmul.f32 0.125, %v282_v6 }
 0x224   :  { %v284_v8 = vsub.f32 %v269_v60, %v283_v7 }
 0x226   :  { %v285_v9 = vmul.f32 %v284_v8, %v284_v8 }
 0x228   :  { %v286_v10 = vrot.slane %v285_v9, 4 }
 0x22a   :  { %v287_v11 = vadd.f32 %v286_v10, %v285_v9 }
 0x22c   :  { %v288_v12 = vrot.slane %v287_v11, 2 }
 0x22e   :  { %v289_v13 = vadd.f32 %v288_v12, %v287_v11 }
 0x230   :  { %v290_v0 = vrot.slane %v289_v13, 1 }
 0x232   :  { %v291_v14 = vadd.f32 %v290_v0, %v289_v13 }
 0x234   :  { %v292_v15 = vmul.f32 0.125, %v291_v14 }
 0x236   :  { %v293_v16 = vadd.f32 1e-05, %v292_v15 }
 0x238   :  { %592 = vrsqrt.f32 %v293_v16 }
 0x242   :  { %v593_v18 = vpop.eup %592 }
 0x243   :  { %v295_v19 = vmul.f32 %v593_v18, %v275_v17 }
 0x245   :  { %v299_v20 = vrot.slane %v295_v19, %v160_v43 }
 0x247   :  { %v300_v22 = vmul.f32 %v299_v20, %v284_v8 }
 0x249   :  { %v305_v23 = vadd.f32 %v463_v21, %v300_v22 }
 0x24b   :  { %v306_v24 = vmax.f32 %v305_v23, 0.0 }
 0x24d   :  { %v307_v25 = vpack.c.bf16 %v306_v24, %v306_v24 }
 0x24f   :  { %557 = vmatmul.mubr.bf16.vlgmr.msra.gmra.mrb[4].mxu0 %v307_v25 }
 0x322   :  { %v412_v27 = vpop.f32.mrb[4].mxu0 }
 0x323   :  { %v413_v28 = vadd.f32 %v464_v26, %v412_v27  ;;  %v558_v29 = vpop.f32.mrb[5].mxu0 }
 0x324   :  { %v415_v30 = vpop.f32.mrb[6].mxu0 }
 0x325   :  { %418 = vmax.xlane.f32.xlu0 %v413_v28  ;;  %v559_v31 = vpop.f32.mrb[7].mxu0 }
 0x3b2   :  { %v419_v32 = vpop.xlane.xlu0 %418 }
 0x3b3   :  { %v420_v33 = vsub.f32 %v413_v28, %v419_v32 }
 0x3b5   :  { %v421_v34 = vmul.f32 1.442695, %v420_v33 }
 0x3b7   :  { %594 = vpow2.f32 %v421_v34 }
 0x3c1   :  { %v595_v35 = vpop.eup %594 }
 0x3c2   :  { %423 = vadd.xlane.f32.xlu0 %v595_v35 }
 0x44f   :  { %v424_v36 = vpop.xlane.xlu0 %423 }
 0x450   :  { %596 = vrcp.f32 %v424_v36 }
 0x45a   :  { %v597_v37 = vpop.eup %596 }
 0x45b   :  { %v426_v38 = vmul.f32 %v597_v37, %v424_v36 }
 0x45d   :  { %v427_v39 = vsub.f32 2.0, %v426_v38 }
 0x45f   :  { %v428_v40 = vmul.f32 %v597_v37, %v427_v39 }
 0x461   :  { %v429_v41 = vmul.f32 %v595_v35, %v428_v40 }
 0x463   :  { %430 = vst [vmem:[#allocation5] sm:$0xff] %v429_v41 }
 0x464   :  { %631 = shalt.err (!%p628_p12)
}
 0x465   :  { %s632_s13 = scalar_lea.hbm %s747_s3, 128 }
 0x466   :  { %p633_p13 = scmp.ne.s32.totalorder %s747_s3, %s632_s13  ;;  %p636_p0 = scmp.lt.u32.totalorder %s632_s13, %s747_s3 }
 0x468   :  { %p638_p1 = pnand %p636_p0, %p633_p13 }
 0x46a   :  { %641 = shalt.err (!%p638_p1)
}
 0x46b   :  { %440 = dma.vmem_to_hbm [thread:$0]  %s438_s10, 128, %s747_s3, [#allocation4]  }
 0x46c   :  { %644 = dma.done.wait [#allocation4], 128  }
 0x46d   :  { %645 = vsyncadd [#allocation4], 4294967168 }
 0x46e   :  { %444 = vsyncpa [#allocation3], 1 }
 0x46f   :  { %445 = vsyncpa [#allocation4], 1 }

</bundles_post_ra>
